<compile_context>
chip_gen: v5e
topology: v5e:2x2
jax: 0.10.0
libtpu: 0.0.40
codegen_flags: <defaults>
</compile_context>

<pallas_src>
import functools

import jax
import jax.numpy as jnp
from jax.experimental import pallas as pl
from jax.experimental.pallas import tpu as pltpu


def _round_up(x, m):
    return (x + m - 1) // m * m


def _bigram_loss_kernel(idx_ref, tgt_ref, table_ref, logits_ref, nll_ref, *,
                        vocab_size):
    """One token tile: one-hot MXU gather of embedding rows + per-row CE nll."""
    tn = idx_ref.shape[0]
    c = table_ref.shape[1]                                  # padded vocab (x128)
    lane = jax.lax.broadcasted_iota(jnp.int32, (tn, c), 1)

    tok = idx_ref[...]                                      # (TN, 1) int32
    onehot = (lane == tok).astype(jnp.float32)              # (TN, C)
    logits = jnp.dot(onehot, table_ref[...],
                     preferred_element_type=jnp.float32)    # (TN, C) on the MXU
    logits_ref[...] = logits.astype(logits_ref.dtype)       # one unmasked block store

    # Batched cross-entropy over the tile; padded lanes (>= vocab_size) excluded.
    valid = lane < vocab_size
    masked = jnp.where(valid, logits, jnp.float32(-1e30))
    m = jnp.max(masked, axis=-1, keepdims=True)
    lse = m + jnp.log(jnp.sum(jnp.exp(masked - m), axis=-1, keepdims=True))
    tgt = tgt_ref[...]                                      # (TN, 1) int32
    tgt_logit = jnp.sum(jnp.where(lane == tgt, logits, jnp.float32(0.0)),
                        axis=-1, keepdims=True)
    nll_ref[...] = lse - tgt_logit                          # (TN, 1)


def _bigram_logits_kernel(idx_ref, table_ref, logits_ref):
    """Logits-only variant (targets=None path): pure one-hot gather."""
    tn = idx_ref.shape[0]
    c = table_ref.shape[1]
    lane = jax.lax.broadcasted_iota(jnp.int32, (tn, c), 1)
    onehot = (lane == idx_ref[...]).astype(jnp.float32)
    logits = jnp.dot(onehot, table_ref[...], preferred_element_type=jnp.float32)
    logits_ref[...] = logits.astype(logits_ref.dtype)


def bigram_forward(table, idx, targets=None, *, tile_tokens=512,
                   logits_dtype=jnp.float32):
    """Equivalent of BigramLanguageModel.forward(idx, targets).

    Returns (logits, loss).  Like the PyTorch module, logits are (B, T, V) when
    targets is None and (B*T, V) when targets are provided.
    `logits_dtype=jnp.bfloat16` halves logits writeback bytes on v6e/v7x.
    """
    B, T = idx.shape
    V = table.shape[0]
    N = B * T

    C = _round_up(V, 128)                    # lane-dense padded vocab
    TN = min(tile_tokens, _round_up(N, 8))   # token tile, multiple of 8 sublanes
    N_pad = _round_up(N, TN)
    n_tiles = N_pad // TN

    table_p = jnp.pad(table.astype(jnp.float32), ((0, C - V), (0, C - V)))
    idx_col = jnp.pad(idx.reshape(N).astype(jnp.int32),
                      (0, N_pad - N)).reshape(N_pad, 1)

    compiler_params = pltpu.CompilerParams(
        dimension_semantics=("parallel",),
        vmem_limit_bytes=32 * 1024 * 1024,   # safe on v5e/v6e (128 MiB) and v7x (64 MiB)
    )

    if targets is None:
        logits_p = pl.pallas_call(
            _bigram_logits_kernel,
            out_shape=jax.ShapeDtypeStruct((N_pad, C), logits_dtype),
            grid_spec=pltpu.PrefetchScalarGridSpec(
                num_scalar_prefetch=0,
                grid=(n_tiles,),
                in_specs=[
                    pl.BlockSpec((TN, 1), lambda i: (i, 0)),   # token ids
                    pl.BlockSpec((C, C), lambda i: (0, 0)),    # full table, VMEM-resident
                ],
                out_specs=pl.BlockSpec((TN, C), lambda i: (i, 0)),
            ),
            compiler_params=compiler_params,
        )(idx_col, table_p)
        logits = logits_p[:N, :V].reshape(B, T, V)
        return logits, None

    tgt_col = jnp.pad(targets.reshape(N).astype(jnp.int32),
                      (0, N_pad - N)).reshape(N_pad, 1)

    kernel = functools.partial(_bigram_loss_kernel, vocab_size=V)
    logits_p, nll = pl.pallas_call(
        kernel,
        out_shape=(
            jax.ShapeDtypeStruct((N_pad, C), logits_dtype),
            jax.ShapeDtypeStruct((N_pad, 1), jnp.float32),
        ),
        grid_spec=pltpu.PrefetchScalarGridSpec(
            num_scalar_prefetch=0,
            grid=(n_tiles,),
            in_specs=[
                pl.BlockSpec((TN, 1), lambda i: (i, 0)),       # token ids
                pl.BlockSpec((TN, 1), lambda i: (i, 0)),       # targets
                pl.BlockSpec((C, C), lambda i: (0, 0)),        # full table
            ],
            out_specs=[
                pl.BlockSpec((TN, C), lambda i: (i, 0)),       # logits tile
                pl.BlockSpec((TN, 1), lambda i: (i, 0)),       # per-row nll
            ],
        ),
        compiler_params=compiler_params,
    )(idx_col, tgt_col, table_p)

    # PyTorch returns logits reshaped to (B*T, V) when targets are given.
    logits = logits_p[:N, :V]
    loss = jnp.sum(nll[:N, 0]) / jnp.float32(N)
    return logits, loss


def _reference_forward(table, idx, targets):
    """Pure-JAX reference of the PyTorch forward for verification."""
    logits_btv = table[idx]                                  # (B, T, V)
    if targets is None:
        return logits_btv, None
    B, T, V = logits_btv.shape
    lf = logits_btv.reshape(B * T, V)
    tf = targets.reshape(B * T)
    lse = jax.scipy.special.logsumexp(lf, axis=-1)
    nll = lse - jnp.take_along_axis(lf, tf[:, None], axis=-1)[:, 0]
    return lf, jnp.mean(nll)


if __name__ == "__main__":
    vocab_size = 65   # Karpathy tiny-shakespeare char vocab
    B, T = 2, 8

    key = jax.random.PRNGKey(0)
    k_table, k_idx, k_tgt = jax.random.split(key, 3)

    # nn.Embedding(vocab_size, vocab_size) weight, deterministic N(0, 1) init.
    token_embedding_table = jax.random.normal(
        k_table, (vocab_size, vocab_size), dtype=jnp.float32
    )
    idx = jax.random.randint(k_idx, (B, T), 0, vocab_size, dtype=jnp.int32)
    targets = jax.random.randint(k_tgt, (B, T), 0, vocab_size, dtype=jnp.int32)

    # ---- with targets: (B*T, V) logits + scalar mean CE loss ----
    logits, loss = bigram_forward(token_embedding_table, idx, targets)
    logits = jax.block_until_ready(logits)
    loss = jax.block_until_ready(loss)

    ref_logits, ref_loss = _reference_forward(token_embedding_table, idx, targets)
    assert logits.shape == (B * T, vocab_size)
    assert jnp.allclose(logits, ref_logits, atol=1e-5, rtol=1e-5)
    assert jnp.allclose(loss, ref_loss, atol=1e-4, rtol=1e-4)

    # ---- targets=None path: (B, T, V) logits, loss is None ----
    logits_only, none_loss = bigram_forward(token_embedding_table, idx, None)
    logits_only = jax.block_until_ready(logits_only)
    ref_logits_btv, _ = _reference_forward(token_embedding_table, idx, None)
    assert none_loss is None
    assert logits_only.shape == (B, T, vocab_size)
    assert jnp.allclose(logits_only, ref_logits_btv, atol=1e-5, rtol=1e-5)

    print("KERNEL_OK")
</pallas_src>

<mosaic_0001>
module attributes {stable_mosaic.version = 11 : i64} {
  func.func @_bigram_loss_kernel(%arg0: i32, %arg1: memref<16x1xi32, #tpu.memory_space<vmem>>, %arg2: memref<16x1xi32, #tpu.memory_space<vmem>>, %arg3: memref<128x128xf32, #tpu.memory_space<vmem>>, %arg4: memref<16x128xf32, #tpu.memory_space<vmem>>, %arg5: memref<16x1xf32, #tpu.memory_space<vmem>>) attributes {dimension_semantics = [#tpu.dimension_semantics<parallel>], iteration_bounds = array<i64: 1>, scalar_prefetch = 0 : i64, scratch_operands = 0 : i64, tpu.core_type = #tpu.core_type<tc>, window_params = [{transform_indices = @transform_0, window_bounds = array<i64: 16, 1>}, {transform_indices = @transform_1, window_bounds = array<i64: 16, 1>}, {pipeline_mode = #tpu.pipeline_mode<synchronous>, transform_indices = @transform_2, window_bounds = array<i64: 128, 128>}, {transform_indices = @transform_3, window_bounds = array<i64: 16, 128>}, {transform_indices = @transform_4, window_bounds = array<i64: 16, 1>}]} {
    %0 = tpu.iota {dimensions = array<i32: 1>} : vector<16x128xi32>
    %c0 = arith.constant 0 : index
    %c0_0 = arith.constant 0 : index
    %1 = vector.load %arg1[%c0, %c0_0] : memref<16x1xi32, #tpu.memory_space<vmem>>, vector<16x1xi32>
    %2 = vector.broadcast %1 : vector<16x1xi32> to vector<16x128xi32>
    %3 = arith.cmpi eq, %0, %2 : vector<16x128xi32>
    %4 = arith.extui %3 : vector<16x128xi1> to vector<16x128xi32>
    %5 = arith.sitofp %4 : vector<16x128xi32> to vector<16x128xf32>
    %c0_1 = arith.constant 0 : index
    %c0_2 = arith.constant 0 : index
    %6 = vector.load %arg3[%c0_1, %c0_2] : memref<128x128xf32, #tpu.memory_space<vmem>>, vector<128x128xf32>
    %cst = arith.constant dense<0.000000e+00> : vector<16x128xf32>
    %7 = tpu.matmul %5, %6, %cst {dimension_numbers = #tpu.dot_dimension_numbers<[1], [0], [0], [1], [0, 0, 1, 1], [], []>} : vector<16x128xf32>, vector<128x128xf32>, vector<16x128xf32> -> vector<16x128xf32>
    %c0_3 = arith.constant 0 : index
    %c0_4 = arith.constant 0 : index
    %8 = vector.load %arg4[%c0_3, %c0_4] : memref<16x128xf32, #tpu.memory_space<vmem>>, vector<16x128xf32>
    tpu.vector_store %arg4[%c0_3, %c0_4], %7 {strides = array<i32>} : memref<16x128xf32, #tpu.memory_space<vmem>>, vector<16x128xf32>,
    %c65_i32 = arith.constant 65 : i32
    %9 = vector.broadcast %c65_i32 : i32 to vector<16x128xi32>
    %10 = arith.cmpi slt, %0, %9 : vector<16x128xi32>
    %cst_5 = arith.constant -1.000000e+30 : f32
    %11 = vector.broadcast %cst_5 : f32 to vector<16x128xf32>
    %12 = arith.select %10, %7, %11 : vector<16x128xi1>, vector<16x128xf32>
    %cst_6 = arith.constant dense<0xFF800000> : vector<16xf32>
    %13 = vector.multi_reduction <maximumf>, %12, %cst_6 [1] : vector<16x128xf32> to vector<16xf32>
    %14 = vector.shape_cast %13 : vector<16xf32> to vector<16x1xf32>
    %15 = vector.broadcast %14 : vector<16x1xf32> to vector<16x128xf32>
    %16 = arith.subf %12, %15 : vector<16x128xf32>
    %17 = math.exp %16 : vector<16x128xf32>
    %cst_7 = arith.constant dense<0.000000e+00> : vector<16xf32>
    %18 = vector.multi_reduction <add>, %17, %cst_7 [1] : vector<16x128xf32> to vector<16xf32>
    %19 = vector.shape_cast %18 : vector<16xf32> to vector<16x1xf32>
    %20 = math.log %19 : vector<16x1xf32>
    %21 = arith.addf %14, %20 : vector<16x1xf32>
    %c0_8 = arith.constant 0 : index
    %c0_9 = arith.constant 0 : index
    %22 = vector.load %arg2[%c0_8, %c0_9] : memref<16x1xi32, #tpu.memory_space<vmem>>, vector<16x1xi32>
    %23 = vector.broadcast %22 : vector<16x1xi32> to vector<16x128xi32>
    %24 = arith.cmpi eq, %0, %23 : vector<16x128xi32>
    %cst_10 = arith.constant 0.000000e+00 : f32
    %25 = vector.broadcast %cst_10 : f32 to vector<16x128xf32>
    %26 = arith.select %24, %7, %25 : vector<16x128xi1>, vector<16x128xf32>
    %cst_11 = arith.constant dense<0.000000e+00> : vector<16xf32>
    %27 = vector.multi_reduction <add>, %26, %cst_11 [1] : vector<16x128xf32> to vector<16xf32>
    %28 = vector.shape_cast %27 : vector<16xf32> to vector<16x1xf32>
    %29 = arith.subf %21, %28 : vector<16x1xf32>
    %c0_12 = arith.constant 0 : index
    %c0_13 = arith.constant 0 : index
    %30 = vector.load %arg5[%c0_12, %c0_13] : memref<16x1xf32, #tpu.memory_space<vmem>>, vector<16x1xf32>
    tpu.vector_store %arg5[%c0_12, %c0_13], %29 {strides = array<i32>} : memref<16x1xf32, #tpu.memory_space<vmem>>, vector<16x1xf32>,
    return
  }
  func.func @transform_0(%arg0: i32) -> (i32, i32) {
    %c0_i32 = arith.constant 0 : i32
    %c0_i32_0 = arith.constant 0 : i32
    return %arg0, %c0_i32 : i32, i32
  }
  func.func @transform_1(%arg0: i32) -> (i32, i32) {
    %c0_i32 = arith.constant 0 : i32
    %c0_i32_0 = arith.constant 0 : i32
    return %arg0, %c0_i32 : i32, i32
  }
  func.func @transform_2(%arg0: i32) -> (i32, i32) {
    %c0_i32 = arith.constant 0 : i32
    %c0_i32_0 = arith.constant 0 : i32
    %c0_i32_1 = arith.constant 0 : i32
    return %c0_i32, %c0_i32_0 : i32, i32
  }
  func.func @transform_3(%arg0: i32) -> (i32, i32) {
    %c0_i32 = arith.constant 0 : i32
    %c0_i32_0 = arith.constant 0 : i32
    return %arg0, %c0_i32 : i32, i32
  }
  func.func @transform_4(%arg0: i32) -> (i32, i32) {
    %c0_i32 = arith.constant 0 : i32
    %c0_i32_0 = arith.constant 0 : i32
    return %arg0, %c0_i32 : i32, i32
  }
}

</mosaic_0001>

<bundles_post_ra>
// kernel: tpu_custom_call.1
= control target key start
LH: loop header
LB: loop body
LE: loop exit
PB: predicated region body
PF: predicated region fallthrough
CT: control target
= control target key end

     0   :  { %10 = vsyncpa [#allocation3], 0  ;;  %s306_s0 = inlined_call_operand.vmem [shape: s32[16,1], index: 0, kind: input, shape index: {}]   ;;  %s307_s1 = inlined_call_operand.vmem [shape: s32[16,1], index: 1, kind: input, shape index: {}]   ;;  %s308_s2 = inlined_call_operand.hbm [shape: f32[128,128], index: 2, kind: input, shape index: {}]   ;;  %s309_s3 = inlined_call_operand.hbm [shape: f32[16,128], index: 3, kind: output, shape index: {0}]   ;;  %s310_s4 = inlined_call_operand.vmem [shape: f32[16,1], index: 4, kind: output, shape index: {1}]  }
   0x1   :  { %11 = vsyncpa [#allocation4], 0  ;;  %s20_s17 = sshll.u32 %s308_s2, 4  ;;  %s245_s18 = smov [#allocation2]   ;;  %s21_s17 = int_to_ptr.hbm [resolvable:$true] %s20_s17 }
   0x2   :  { %s22_s19 = sshll.u32 %s245_s18, 4  ;;  %s246_s20 = smov 128   ;;  %s23_s19 = int_to_ptr.vmem [resolvable:$true] %s22_s19 }
   0x3   :  { %s247_s21 = smov 8  }
   0x4   :  { %28 = dma.hbm_to_vmem [thread:$0]  %s21_s17, 2048, %s23_s19, [#allocation3], %s246_s20, %s246_s20, %s247_s21  }
   0x5   :  { %241 = dma.done.wait [#allocation3], 2048  }
   0x6   :  { %242 = vsyncadd [#allocation3], 4294965248  ;;  %v248_v0 = vmov 0   ;;  %v35_v1 = vld [vmem:[%s306_s0] sm:$0xff]  ;;  %v64_v2 = vld [vmem:[#allocation2 + $0x78] sm:$0xff]  ;;  %v33_v21 = vlaneseq  ;;  %v249_v24 = vmov 1.0  }
   0x7   :  { %183 = vset.pattern.permute.xlu0 %v248_v0  ;;  %184 = vset.pattern.permute.xlu2 %v248_v0  ;;  %v63_v3 = vld [vmem:[#allocation2 + $0x70] sm:$0xff]  ;;  %v62_v4 = vld [vmem:[#allocation2 + $0x68] sm:$0xff]  ;;  %v61_v5 = vld [vmem:[#allocation2 + $0x60] sm:$0xff]  ;;  %s140_s5 = sshll.u32 %s309_s3, 4  ;;  %vm131_vm5 = vcmask 7168   ;;  %s141_s5 = int_to_ptr.hbm [resolvable:$true] %s140_s5 }
   0x8   :  { %38 = vperm.xlu0 %183, %v35_v1   ;;  %65 = vmatpush.msra.mxu0 %v64_v2  ;;  %v36_v6 = vld [vmem:[%s306_s0 + $0x8] sm:$0xff]  ;;  %v60_v7 = vld [vmem:[#allocation2 + $0x58] sm:$0xff]  ;;  %v59_v8 = vld [vmem:[#allocation2 + $0x50] sm:$0xff]  ;;  %v34_v22 = vand.u32 127, %v33_v21 }
   0x9   :  { %161 = vmatpush.msra.mxu1 %v64_v2  ;;  %v58_v9 = vld [vmem:[#allocation2 + $0x48] sm:$0xff]  ;;  %v57_v10 = vld [vmem:[#allocation2 + $0x40] sm:$0xff]  ;;  %v56_v11 = vld [vmem:[#allocation2 + $0x38] sm:$0xff] }
   0xa   :  { %66 = vmatpush.msra.mxu0 %v63_v3  ;;  %v55_v12 = vld [vmem:[#allocation2 + $0x30] sm:$0xff]  ;;  %v54_v13 = vld [vmem:[#allocation2 + $0x28] sm:$0xff]  ;;  %v53_v14 = vld [vmem:[#allocation2 + $0x20] sm:$0xff]  ;;  %vm90_vm3 = vcmp.lt.s32.totalorder %v34_v22, 65 }
   0xb   :  { %162 = vmatpush.msra.mxu1 %v63_v3  ;;  %v52_v15 = vld [vmem:[#allocation2 + $0x18] sm:$0xff]  ;;  %v51_v16 = vld [vmem:[#allocation2 + $0x10] sm:$0xff]  ;;  %v50_v17 = vld [vmem:[#allocation2 + $0x8] sm:$0xff] }
   0xc   :  { %67 = vmatpush.msra.mxu0 %v62_v4  ;;  %v49_v18 = vld [vmem:[#allocation2] sm:$0xff]  ;;  %v114_v20 = vld [vmem:[%s307_s1 + $0x8] sm:$0xff] }
   0xd   :  { %163 = vmatpush.msra.mxu1 %v62_v4  ;;  %v113_v19 = vld [vmem:[%s307_s1] sm:$0xff]  ;;  %s250_s1 = smov [#allocation5]  }
   0xe   :  { %68 = vmatpush.msra.mxu0 %v61_v5  ;;  %116 = vperm.xlu2 %184, %v113_v19   ;;  %s138_s28 = sshll.u32 %s250_s1, 4  ;;  %s139_s28 = int_to_ptr.vmem [resolvable:$true] %s138_s28 }
   0xf   :  { %164 = vmatpush.msra.mxu1 %v61_v5 }
  0x10   :  { %41 = vperm.xlu0 %183, %v36_v6   ;;  %69 = vmatpush.msra.mxu0 %v60_v7 }
  0x11   :  { %165 = vmatpush.msra.mxu1 %v60_v7 }
  0x12   :  { %70 = vmatpush.msra.mxu0 %v59_v8 }
  0x13   :  { %166 = vmatpush.msra.mxu1 %v59_v8 }
  0x14   :  { %71 = vmatpush.msra.mxu0 %v58_v9 }
  0x15   :  { %167 = vmatpush.msra.mxu1 %v58_v9 }
  0x16   :  { %72 = vmatpush.msra.mxu0 %v57_v10  ;;  %119 = vperm.xlu2 %184, %v114_v20  }
  0x17   :  { %168 = vmatpush.msra.mxu1 %v57_v10 }
  0x18   :  { %73 = vmatpush.msra.mxu0 %v56_v11 }
  0x19   :  { %169 = vmatpush.msra.mxu1 %v56_v11 }
  0x1a   :  { %74 = vmatpush.msra.mxu0 %v55_v12 }
  0x1b   :  { %170 = vmatpush.msra.mxu1 %v55_v12 }
  0x1c   :  { %75 = vmatpush.msra.mxu0 %v54_v13 }
  0x1d   :  { %171 = vmatpush.msra.mxu1 %v54_v13 }
  0x1e   :  { %76 = vmatpush.msra.mxu0 %v53_v14 }
  0x1f   :  { %172 = vmatpush.msra.mxu1 %v53_v14 }
  0x20   :  { %77 = vmatpush.msra.mxu0 %v52_v15 }
  0x21   :  { %173 = vmatpush.msra.mxu1 %v52_v15 }
  0x22   :  { %78 = vmatpush.msra.mxu0 %v51_v16 }
  0x23   :  { %174 = vmatpush.msra.mxu1 %v51_v16 }
  0x24   :  { %79 = vmatpush.msra.mxu0 %v50_v17 }
  0x25   :  { %175 = vmatpush.msra.mxu1 %v50_v17 }
  0x26   :  { %80 = vmatpush.msra.mxu0 %v49_v18 }
  0x27   :  { %176 = vmatpush.msra.mxu1 %v49_v18 }
  0x68   :  { %v117_v26 = vpop.permute.xlu2 %116 }
  0x69   :  { %vm121_vm2 = vcmp.eq.s32.totalorder %v34_v22, %v117_v26 }
  0x70   :  { %v120_v40 = vpop.permute.xlu2 %119 }
  0x71   :  { %vm122_vm4 = vcmp.eq.s32.totalorder %v34_v22, %v120_v40 }
  0x7a   :  { %v39_v23 = vpop.permute.xlu0 %38 }
  0x7b   :  { %vm43_vm0 = vcmp.eq.s32.totalorder %v34_v22, %v39_v23 }
  0x7c   :  { %159 = vmatmul.msk.f32.vlgmr.msra.gmra.mxu0 %vm43_vm0, %v249_v24 }
  0x82   :  { %v42_v25 = vpop.permute.xlu0 %41 }
  0x83   :  { %vm44_vm1 = vcmp.eq.s32.totalorder %v34_v22, %v42_v25 }
  0x84   :  { %160 = vmatmul.msk.f32.vlgmr.msra.gmra.mxu1 %vm44_vm1, %v249_v24 }
  0xf9   :  { %v82_v27 = vpop.f32.mrf.mxu0 }
  0xfa   :  { %88 = vst [vmem:[#allocation5] sm:$0xff] %v82_v27  ;;  %v123_v28 = vsel %vm121_vm2, %v82_v27, 0.0  ;;  %v91_v29 = vsel %vm90_vm3, %v82_v27, -1e+30 }
  0xfb   :  { %125 = vadd.xlane.f32.xlu2 %v123_v28  ;;  %93 = vmax.xlane.f32.xlu1 %v91_v29 }
 0x101   :  { %v85_v30 = vpop.f32.mrf.mxu1 }
 0x102   :  { %89 = vst [vmem:[#allocation5 + $0x8] sm:$0xff] %v85_v30  ;;  %v92_v31 = vsel %vm90_vm3, %v85_v30, -1e+30  ;;  %v124_v41 = vsel %vm122_vm4, %v85_v30, 0.0 }
 0x103   :  { %95 = vmax.xlane.f32.xlu1 %v92_v31  ;;  %146 = dma.vmem_to_hbm [thread:$0]  %s139_s28, 256, %s141_s5, [#allocation4], %s246_s20, %s246_s20, %s247_s21  }
 0x16e   :  { %v94_v32 = vpop.xlane.xlu1 %93  ;;  %v126_v47 = vpop.xlane.xlu2 %125 }
 0x16f   :  { %v97_v33 = vsub.f32 %v91_v29, %v94_v32 }
 0x171   :  { %v99_v34 = vmul.f32 1.442695, %v97_v33 }
 0x173   :  { %185 = vpow2.f32 %v99_v34 }
 0x176   :  { %v96_v35 = vpop.xlane.xlu1 %95 }
 0x177   :  { %v98_v36 = vsub.f32 %v92_v31, %v96_v35 }
 0x179   :  { %v186_v37 = vpop.eup %185  ;;  %v101_v38 = vmul.f32 1.442695, %v98_v36 }
 0x17a   :  { %103 = vadd.xlane.f32.xlu0 %v186_v37 }
 0x17b   :  { %187 = vpow2.f32 %v101_v38 }
 0x181   :  { %v188_v39 = vpop.eup %187 }
 0x182   :  { %105 = vadd.xlane.f32.xlu1 %v188_v39 }
 0x18a   :  { %127 = vadd.xlane.f32.xlu1 %v124_v41 }
 0x1ed   :  { %v104_v42 = vpop.xlane.xlu0 %103 }
 0x1ee   :  { %189 = vlog2.f32 %v104_v42 }
 0x1f4   :  { %v190_v43 = vpop.eup %189 }
 0x1f5   :  { %v108_v44 = vmul.f32 0.6931472, %v190_v43  ;;  %v106_v45 = vpop.xlane.xlu1 %105 }
 0x1f6   :  { %191 = vlog2.f32 %v106_v45 }
 0x1f7   :  { %v111_v46 = vadd.f32 %v108_v44, %v94_v32 }
 0x1f9   :  { %v129_v48 = vsub.f32 %v111_v46, %v126_v47 }
 0x1fb   :  { %132 = vst.msk [vmem:[%s310_s4] sm:$0xff] %vm131_vm5, %v129_v48 }
 0x1fc   :  { %v192_v49 = vpop.eup %191 }
 0x1fd   :  { %v110_v50 = vmul.f32 0.6931472, %v192_v49  ;;  %v128_v52 = vpop.xlane.xlu1 %127 }
 0x1ff   :  { %v112_v51 = vadd.f32 %v110_v50, %v96_v35 }
 0x201   :  { %v130_v53 = vsub.f32 %v112_v51, %v128_v52 }
 0x203   :  { %133 = vst.msk [vmem:[%s310_s4 + $0x8] sm:$0xff] %vm131_vm5, %v130_v53 }
 0x204   :  { %243 = dma.done.wait [#allocation4], 256  }
 0x205   :  { %244 = vsyncadd [#allocation4], 4294967040 }
 0x206   :  { %155 = vsyncpa [#allocation3], 1 }
 0x207   :  { %156 = vsyncpa [#allocation4], 1 }

</bundles_post_ra>
